<compile_context>
chip_gen: v5e
topology: v5e:2x2
jax: 0.10.0
libtpu: 0.0.40
codegen_flags: <defaults>
</compile_context>

<pallas_src>
import functools

import jax
import jax.numpy as jnp
from jax import lax
from jax.experimental import pallas as pl
from jax.experimental.pallas import tpu as pltpu


def _round_up(a: int, b: int) -> int:
    return ((a + b - 1) // b) * b


def _linear_kernel(x_ref, w_ref, b_ref, o_ref, *, compute_dtype):
    # x tile: [bm, D], w tile: [bc, D] (PyTorch layout), bias tile: [1, bc].
    x = x_ref[...]
    w = w_ref[...]
    if compute_dtype is not None:
        # In-kernel cast rides free VALU slack next to the MXU / DMA.
        if x.dtype != compute_dtype:
            x = x.astype(compute_dtype)
        if w.dtype != compute_dtype:
            w = w.astype(compute_dtype)
    # Contract the last dim of both operands (== x @ w.T) on the MXU, f32 acc.
    acc = lax.dot_general(
        x, w, (((1,), (1,)), ((), ())), preferred_element_type=jnp.float32
    )
    o_ref[...] = (acc + b_ref[...].astype(jnp.float32)).astype(o_ref.dtype)


@functools.partial(jax.jit, static_argnames=("block_m", "block_c", "compute_dtype"))
def gait_recognition_head(x, weight, bias, *, block_m=512, block_c=512,
                          compute_dtype=None):
    """Linear head: y = x @ weight.T + bias.

    x:      [..., input_dim]            (any leading dims, flattened into M)
    weight: [num_classes, input_dim]    (PyTorch nn.Linear layout, used as-is)
    bias:   [num_classes]
    compute_dtype: optional MXU input dtype (e.g. jnp.bfloat16 on v6e/v7x to
        halve streamed bytes); accumulation and bias add stay in f32.
    returns [..., num_classes] in x.dtype
    """
    *lead, D = x.shape
    C, D2 = weight.shape
    assert D == D2 and bias.shape == (C,)
    out_dtype = x.dtype

    # Collapse leading dims into one big M (free reshape) and make the bias 2-D.
    x2 = x.reshape(-1, D)
    M = x2.shape[0]
    b2 = bias.reshape(1, C)

    # ---- tile sizes (never larger than the array dims -> always legal) ----
    bm = block_m if M >= block_m else M          # full-M block when M is small
    bc = block_c if C > block_c else C           # lane-dense (512) when tiling C

    # Fit the double-buffered tiles in a v7x-safe VMEM budget.
    def footprint(bm_, bc_):
        xb = x.dtype.itemsize
        wb = weight.dtype.itemsize
        ob = jnp.dtype(out_dtype).itemsize
        return 2 * (bm_ * D * xb + bc_ * D * wb + bc_ * 4 + bm_ * bc_ * ob)

    budget = 40 * 1024 * 1024
    while footprint(bm, bc) > budget and bm > 64:
        bm = max(64, bm // 2)
    while footprint(bm, bc) > budget and bc > 128:
        bc = max(128, bc // 2)
    # TODO(synk): if input_dim alone ever overflows VMEM, add an "arbitrary" K
    # grid axis with an f32 VMEM accumulator instead of full-K blocks.

    grid_m = pl.cdiv(M, bm)
    grid_c = pl.cdiv(C, bc)

    # Give v7x's second TensorCore work when the problem is big enough that
    # per-core step overhead doesn't dominate but the grid collapsed to (1, 1).
    if grid_m == 1 and grid_c == 1 and M >= 256:
        bm = _round_up(pl.cdiv(M, 2), 16)
        grid_m = pl.cdiv(M, bm)

    # ---- grid-axis order: keep the more-re-streamed operand block-resident ----
    # m-outer: x streamed once, weight streamed grid_m times.
    # c-outer: weight streamed once, x streamed grid_c times.
    m_outer_bytes = M * D + grid_m * C * D
    c_outer_bytes = C * D + grid_c * M * D
    if m_outer_bytes <= c_outer_bytes:
        grid = (grid_m, grid_c)
        x_map = lambda i, j: (i, 0)
        w_map = lambda i, j: (j, 0)
        b_map = lambda i, j: (0, j)
        o_map = lambda i, j: (i, j)
    else:
        grid = (grid_c, grid_m)
        x_map = lambda j, i: (i, 0)
        w_map = lambda j, i: (j, 0)
        b_map = lambda j, i: (0, j)
        o_map = lambda j, i: (i, j)

    out = pl.pallas_call(
        functools.partial(_linear_kernel, compute_dtype=compute_dtype),
        out_shape=jax.ShapeDtypeStruct((M, C), out_dtype),
        grid=grid,
        in_specs=[
            pl.BlockSpec((bm, D), x_map),   # activations, full K
            pl.BlockSpec((bc, D), w_map),   # weight in [C, D] layout, full K
            pl.BlockSpec((1, bc), b_map),   # bias slice per C-tile
        ],
        out_specs=pl.BlockSpec((bm, bc), o_map),
        compiler_params=pltpu.CompilerParams(
            # Both grid axes are independent -> megacore sharding on v7x.
            dimension_semantics=("parallel", "parallel"),
            # 48 MiB: above the 32 MiB default scoped limit, below v7x's
            # ~56 MiB usable (64 MiB physical); fine on v5e/v6e (128 MiB).
            vmem_limit_bytes=48 * 1024 * 1024,
        ),
    )(x2, weight, b2)

    return out.reshape(*lead, C)


if __name__ == "__main__":
    # Small shapes consistent with the module: per-frame transformer features
    # [B, T, input_dim] fed to the linear head (N-UCLA: 10 action classes).
    B, T, input_dim, num_classes = 4, 16, 64, 10

    key = jax.random.PRNGKey(0)
    kx, kw, kb = jax.random.split(key, 3)

    # nn.Linear-style init: U(-1/sqrt(in), 1/sqrt(in)); PyTorch weight layout.
    bound = 1.0 / jnp.sqrt(jnp.float32(input_dim))
    weight = jax.random.uniform(
        kw, (num_classes, input_dim), dtype=jnp.float32, minval=-bound, maxval=bound
    )
    bias = jax.random.uniform(
        kb, (num_classes,), dtype=jnp.float32, minval=-bound, maxval=bound
    )
    x = jax.random.normal(kx, (B, T, input_dim), dtype=jnp.float32)

    ref = x @ weight.T + bias

    # f32 path: tight tolerance vs the plain-JAX reference.
    out = gait_recognition_head(x, weight, bias)
    out = jax.block_until_ready(out)
    assert out.shape == (B, T, num_classes)
    assert jnp.allclose(out, ref, atol=1e-5, rtol=1e-5)

    # bf16-MXU-input path (v6e/v7x bandwidth fast path): f32 accumulation,
    # looser tolerance.
    out_bf16 = gait_recognition_head(x, weight, bias, compute_dtype=jnp.bfloat16)
    out_bf16 = jax.block_until_ready(out_bf16)
    assert out_bf16.shape == (B, T, num_classes)
    assert jnp.allclose(out_bf16, ref, atol=5e-2, rtol=5e-2)

    print("KERNEL_OK")
</pallas_src>

<mosaic_0001>
module attributes {stable_mosaic.version = 11 : i64} {
  func.func @_linear_kernel(%arg0: i32, %arg1: i32, %arg2: memref<64x64xf32, #tpu.memory_space<vmem>>, %arg3: memref<10x64xf32, #tpu.memory_space<vmem>>, %arg4: memref<1x10xf32, #tpu.memory_space<vmem>>, %arg5: memref<64x10xf32, #tpu.memory_space<vmem>>) attributes {dimension_semantics = [#tpu.dimension_semantics<parallel>, #tpu.dimension_semantics<parallel>], iteration_bounds = array<i64: 1, 1>, scalar_prefetch = 0 : i64, scratch_operands = 0 : i64, tpu.core_type = #tpu.core_type<tc>, window_params = [{transform_indices = @transform_0, window_bounds = array<i64: 64, 64>}, {transform_indices = @transform_1, window_bounds = array<i64: 10, 64>}, {transform_indices = @transform_2, window_bounds = array<i64: 1, 10>}, {transform_indices = @transform_3, window_bounds = array<i64: 64, 10>}]} {
    %c0 = arith.constant 0 : index
    %c0_0 = arith.constant 0 : index
    %0 = vector.load %arg2[%c0, %c0_0] : memref<64x64xf32, #tpu.memory_space<vmem>>, vector<64x64xf32>
    %c0_1 = arith.constant 0 : index
    %c0_2 = arith.constant 0 : index
    %1 = vector.load %arg3[%c0_1, %c0_2] : memref<10x64xf32, #tpu.memory_space<vmem>>, vector<10x64xf32>
    %cst = arith.constant dense<0.000000e+00> : vector<64x10xf32>
    %2 = tpu.matmul %0, %1, %cst {dimension_numbers = #tpu.dot_dimension_numbers<[1], [1], [0], [0], [0, 0, 1, 0], [], []>} : vector<64x64xf32>, vector<10x64xf32>, vector<64x10xf32> -> vector<64x10xf32>
    %c0_3 = arith.constant 0 : index
    %c0_4 = arith.constant 0 : index
    %3 = vector.load %arg4[%c0_3, %c0_4] : memref<1x10xf32, #tpu.memory_space<vmem>>, vector<1x10xf32>
    %4 = vector.broadcast %3 : vector<1x10xf32> to vector<64x10xf32>
    %5 = arith.addf %2, %4 : vector<64x10xf32>
    %c0_5 = arith.constant 0 : index
    %c0_6 = arith.constant 0 : index
    %6 = vector.load %arg5[%c0_5, %c0_6] : memref<64x10xf32, #tpu.memory_space<vmem>>, vector<64x10xf32>
    tpu.vector_store %arg5[%c0_5, %c0_6], %5 {strides = array<i32>} : memref<64x10xf32, #tpu.memory_space<vmem>>, vector<64x10xf32>,
    return
  }
  func.func @transform_0(%arg0: i32, %arg1: i32) -> (i32, i32) {
    %c0_i32 = arith.constant 0 : i32
    %c0_i32_0 = arith.constant 0 : i32
    return %arg0, %c0_i32 : i32, i32
  }
  func.func @transform_1(%arg0: i32, %arg1: i32) -> (i32, i32) {
    %c0_i32 = arith.constant 0 : i32
    %c0_i32_0 = arith.constant 0 : i32
    return %arg1, %c0_i32 : i32, i32
  }
  func.func @transform_2(%arg0: i32, %arg1: i32) -> (i32, i32) {
    %c0_i32 = arith.constant 0 : i32
    %c0_i32_0 = arith.constant 0 : i32
    return %c0_i32, %arg1 : i32, i32
  }
  func.func @transform_3(%arg0: i32, %arg1: i32) -> (i32, i32) {
    %c0_i32 = arith.constant 0 : i32
    return %arg0, %arg1 : i32, i32
  }
}

</mosaic_0001>

<bundles_post_ra>
// kernel: gait_recognition_head.1
= control target key start
LH: loop header
LB: loop body
LE: loop exit
PB: predicated region body
PF: predicated region fallthrough
CT: control target
= control target key end

     0   :  { %8 = vsyncpa [#allocation3], 0  ;;  %s301_s0 = inlined_call_operand.hbm [shape: f32[64,64], index: 0, kind: input, shape index: {}]   ;;  %s302_s1 = inlined_call_operand.hbm [shape: f32[10,64], index: 1, kind: input, shape index: {}]   ;;  %s303_s2 = inlined_call_operand.vmem [shape: f32[1,10], index: 2, kind: input, shape index: {}]   ;;  %s304_s3 = inlined_call_operand.vmem [shape: f32[64,10], index: 3, kind: output, shape index: {}]  }
   0x1   :  { %s14_s14 = sshll.u32 %s301_s0, 4  ;;  %s15_s14 = int_to_ptr.hbm [resolvable:$true] %s14_s14 }
   0x2   :  { %9 = vsyncpa [#allocation5], 0  ;;  %s220_s15 = smov [#allocation2]   ;;  %s27_s19 = sshll.u32 %s302_s1, 4  ;;  %s28_s19 = int_to_ptr.hbm [resolvable:$true] %s27_s19 }
   0x3   :  { %s16_s16 = sshll.u32 %s220_s15, 4  ;;  %s221_s20 = smov 128   ;;  %s17_s16 = int_to_ptr.vmem [resolvable:$true] %s16_s16 }
   0x4   :  { %s222_s21 = smov 8   ;;  %s223_s22 = smov [#allocation4]  }
   0x5   :  { %22 = dma.hbm_to_vmem [thread:$0]  %s15_s14, 1024, %s17_s16, [#allocation3], %s221_s20, %s221_s20, %s222_s21  }
   0x6   :  { %s29_s23 = sshll.u32 %s223_s22, 4  ;;  %s30_s23 = int_to_ptr.vmem [resolvable:$true] %s29_s23 }
   0x7   :  { %35 = dma.hbm_to_vmem [thread:$0]  %s28_s19, 256, %s30_s23, [#allocation5], %s221_s20, %s221_s20, %s222_s21  }
   0x8   :  { %216 = dma.done.wait [#allocation3], 1024  }
   0x9   :  { %217 = vsyncadd [#allocation3], 4294966272 }
   0xa   :  { %218 = dma.done.wait [#allocation5], 256  }
   0xb   :  { %219 = vsyncadd [#allocation5], 4294967040  ;;  %vm60_vm0 = vcmask 523264   ;;  %v55_v0 = vld [vmem:[#allocation4 + $0x8] sm:$0x3]  ;;  %v54_v1 = vld [vmem:[#allocation4] sm:$0xff] }
   0xc   :  { %158 = vmatpush.xpose.msk.msra.mxu2 %vm60_vm0, %v55_v0  ;;  %159 = vmatpush.xpose.msk.msra.mxu3 %vm60_vm0, %v55_v0  ;;  %v50_v2 = vld [vmem:[#allocation2 + $0x20] sm:$0xff]  ;;  %v52_v3 = vld [vmem:[#allocation2 + $0x30] sm:$0xff]  ;;  %v51_v6 = vld [vmem:[#allocation2 + $0x28] sm:$0xff]  ;;  %vm132_vm1 = vcmask 80896  }
   0xd   :  { %147 = vmatpush.xpose.msk.msra.mxu0 %vm60_vm0, %v55_v0  ;;  %157 = vmatpush.xpose.msk.msra.mxu1 %vm60_vm0, %v55_v0  ;;  %v46_v4 = vld [vmem:[#allocation2] sm:$0xff]  ;;  %v48_v5 = vld [vmem:[#allocation2 + $0x10] sm:$0xff]  ;;  %v53_v7 = vld [vmem:[#allocation2 + $0x38] sm:$0xff] }
   0xe   :  { %v47_v8 = vld [vmem:[#allocation2 + $0x8] sm:$0xff]  ;;  %v49_v9 = vld [vmem:[#allocation2 + $0x18] sm:$0xff]  ;;  %v167_v10 = vld [vmem:[%s303_s2] ss:$0 sm:$0xff] }
  0x10   :  { %161 = vmatpush.xpose.msk.msra.mxu2 %vm60_vm0, %v54_v1  ;;  %162 = vmatpush.xpose.msk.msra.mxu3 %vm60_vm0, %v54_v1 }
  0x11   :  { %148 = vmatpush.xpose.msk.msra.mxu0 %vm60_vm0, %v54_v1  ;;  %160 = vmatpush.xpose.msk.msra.mxu1 %vm60_vm0, %v54_v1 }
  0x13   :  { %153 = vmatmul.msk.f32.vlgmr.msra.gmra.mxu2 %vm60_vm0, %v50_v2  ;;  %155 = vmatmul.msk.f32.vlgmr.msra.gmra.mxu3 %vm60_vm0, %v52_v3 }
  0x14   :  { %149 = vmatmul.msk.f32.vlgmr.msra.gmra.mxu0 %vm60_vm0, %v46_v4  ;;  %151 = vmatmul.msk.f32.vlgmr.msra.gmra.mxu1 %vm60_vm0, %v48_v5 }
  0x1b   :  { %154 = vmatmul.msk.f32.gmra.mxu2 %vm60_vm0, %v51_v6  ;;  %156 = vmatmul.msk.f32.gmra.mxu3 %vm60_vm0, %v53_v7 }
  0x1c   :  { %150 = vmatmul.msk.f32.gmra.mxu0 %vm60_vm0, %v47_v8  ;;  %152 = vmatmul.msk.f32.gmra.mxu1 %vm60_vm0, %v49_v9 }
  0x91   :  { %v108_v11 = vpop.f32.mrf.mxu0  ;;  %v114_v12 = vpop.f32.mrf.mxu1 }
  0x92   :  { %v109_v13 = vadd.f32 %v167_v10, %v108_v11  ;;  %v115_v14 = vadd.f32 %v167_v10, %v114_v12 }
  0x94   :  { %133 = vst.msk [vmem:[%s304_s3] sm:$0xff] %vm132_vm1, %v109_v13 }
  0x95   :  { %135 = vst.msk [vmem:[%s304_s3 + $0x10] sm:$0xff] %vm132_vm1, %v115_v14 }
  0x96   :  { %v120_v15 = vpop.f32.mrf.mxu2  ;;  %v126_v16 = vpop.f32.mrf.mxu3 }
  0x97   :  { %v121_v17 = vadd.f32 %v167_v10, %v120_v15  ;;  %v127_v18 = vadd.f32 %v167_v10, %v126_v16 }
  0x99   :  { %137 = vst.msk [vmem:[%s304_s3 + $0x20] sm:$0xff] %vm132_vm1, %v121_v17  ;;  %v111_v19 = vpop.f32.mrf.mxu0  ;;  %v117_v20 = vpop.f32.mrf.mxu1 }
  0x9a   :  { %139 = vst.msk [vmem:[%s304_s3 + $0x30] sm:$0xff] %vm132_vm1, %v127_v18  ;;  %v112_v21 = vadd.f32 %v167_v10, %v111_v19  ;;  %v118_v22 = vadd.f32 %v167_v10, %v117_v20 }
  0x9c   :  { %134 = vst.msk [vmem:[%s304_s3 + $0x8] sm:$0xff] %vm132_vm1, %v112_v21 }
  0x9d   :  { %136 = vst.msk [vmem:[%s304_s3 + $0x18] sm:$0xff] %vm132_vm1, %v118_v22 }
  0x9e   :  { %v123_v23 = vpop.f32.mrf.mxu2  ;;  %v129_v24 = vpop.f32.mrf.mxu3 }
  0x9f   :  { %v124_v25 = vadd.f32 %v167_v10, %v123_v23  ;;  %v130_v26 = vadd.f32 %v167_v10, %v129_v24 }
  0xa1   :  { %138 = vst.msk [vmem:[%s304_s3 + $0x28] sm:$0xff] %vm132_vm1, %v124_v25 }
  0xa2   :  { %140 = vst.msk [vmem:[%s304_s3 + $0x38] sm:$0xff] %vm132_vm1, %v130_v26 }
  0xa3   :  { %145 = vsyncpa [#allocation3], 1 }
  0xa4   :  { %146 = vsyncpa [#allocation5], 1 }

</bundles_post_ra>
